<compile_context>
chip_gen: v6e
topology: v6e:2x2x1
jax: 0.10.0
libtpu: 0.0.40
codegen_flags: <defaults>
</compile_context>

<pallas_src>
import functools

import jax
import jax.numpy as jnp
import numpy as np
from jax import lax
from jax.experimental import pallas as pl
from jax.experimental.pallas import tpu as pltpu


def _round_up(x, m):
    return (x + m - 1) // m * m


def _pick_itile(intermediate_dim, requested):
    """Largest multiple of 128 that divides I and is <= requested, else I."""
    if requested >= intermediate_dim:
        return intermediate_dim
    cand = (requested // 128) * 128
    while cand >= 128:
        if intermediate_dim % cand == 0:
            return cand
        cand -= 128
    return intermediate_dim


# ----------------------------------------------------------------------------
# Kernel 1: router — scores = softmax(f32(x) @ f32(W_gate)^T) over a token tile.
# Gate weight stays in native (E, D) layout; expert dim padded to 128 lanes,
# padded columns masked to -inf before softmax.
# ----------------------------------------------------------------------------
def gate_kernel(x_ref, w_ref, s_ref, *, n_valid):
    x = x_ref[...].astype(jnp.float32)            # (tg, D)
    w = w_ref[...].astype(jnp.float32)            # (Epad, D)
    nt = (((1,), (1,)), ((), ()))                 # contract last dims
    logits = lax.dot_general(x, w, nt, preferred_element_type=jnp.float32)
    if logits.shape[-1] != n_valid:               # static: mask padded experts
        col = lax.broadcasted_iota(jnp.int32, logits.shape, 1)
        logits = jnp.where(col < n_valid, logits, -jnp.inf)
    m = jnp.max(logits, axis=-1, keepdims=True)
    e = jnp.exp(logits - m)
    s_ref[...] = e / jnp.sum(e, axis=-1, keepdims=True)


# ----------------------------------------------------------------------------
# Kernel 2: grouped SwiGLU expert GEMM, I-tiled.
# Grid = (token_block b, I_chunk t).  One token block belongs to exactly one
# expert (scalar-prefetched).  f32 accumulator scratch across the I axis.
# ----------------------------------------------------------------------------
def moe_group_gemm_kernel(be_ref, bv_ref, bx_ref, bo_ref,
                          x_ref, scale_ref, gw_ref, uw_ref, dw_ref,
                          o_ref, acc_ref):
    b = pl.program_id(0)
    t = pl.program_id(1)

    @pl.when(bv_ref[b] != 0)
    def _():
        @pl.when(t == 0)
        def _():
            acc_ref[...] = jnp.zeros_like(acc_ref)

        x = x_ref[...]                 # (tm, D)  model dtype
        gw = gw_ref[0]                 # (ti, D)  native layout
        uw = uw_ref[0]                 # (ti, D)
        dw = dw_ref[0]                 # (D, ti)
        nt = (((1,), (1,)), ((), ()))  # contract last dims (transposed RHS, MXU-friendly)
        g = lax.dot_general(x, gw, nt, preferred_element_type=jnp.float32)   # (tm, ti)
        u = lax.dot_general(x, uw, nt, preferred_element_type=jnp.float32)   # (tm, ti)
        h = (g * jax.nn.sigmoid(g)) * u                                      # SiLU(g)*u
        acc_ref[...] += lax.dot_general(h.astype(dw.dtype), dw, nt,
                                        preferred_element_type=jnp.float32)  # (tm, D)

        @pl.when(t == pl.num_programs(1) - 1)
        def _():
            # top-k combine scale applied in-kernel (rides idle VPU slots).
            o_ref[...] = (acc_ref[...] * scale_ref[...]).astype(o_ref.dtype)


# ----------------------------------------------------------------------------
# Wrapper: reproduces FeedForward.forward semantics on a single device.
# ----------------------------------------------------------------------------
@functools.partial(jax.jit,
                   static_argnames=("top_k", "norm_topk_prob", "tm", "tg", "ti"))
def feed_forward(hidden_states, gate_w, gate_proj_w, up_proj_w, down_proj_w,
                 *, top_k, norm_topk_prob, tm=256, tg=256, ti=512):
    # tm: token tile (ALIGN_SIZE_M analogue).  256 fills the v6e/v7x MXU;
    # v5e may prefer 128 when tokens-per-expert are small.
    # ti: intermediate-dim tile (bounds weight VMEM on v7x).
    bsz, seqlen, dim = hidden_states.shape
    x = hidden_states.reshape(-1, dim)                    # (T, D), model dtype
    T, D = x.shape
    E, I, _ = gate_proj_w.shape

    # --- MoEGate: fp32 linear + softmax (Pallas, token-tiled) ----------------
    tg = min(tg, _round_up(T, 8))
    Tp = _round_up(T, tg)
    Epad = _round_up(E, 128)                              # lane-dense router output
    xg = x if Tp == T else jnp.pad(x, ((0, Tp - T), (0, 0)))
    gw_pad = gate_w if Epad == E else jnp.pad(gate_w, ((0, Epad - E), (0, 0)))
    scores = pl.pallas_call(
        functools.partial(gate_kernel, n_valid=E),
        out_shape=jax.ShapeDtypeStruct((Tp, Epad), jnp.float32),
        grid=(Tp // tg,),
        in_specs=[pl.BlockSpec((tg, D), lambda i: (i, 0)),
                  pl.BlockSpec((Epad, D), lambda i: (0, 0))],   # resident gate weight
        out_specs=pl.BlockSpec((tg, Epad), lambda i: (i, 0)),
        compiler_params=pltpu.CompilerParams(
            dimension_semantics=("parallel",),
            vmem_limit_bytes=32 * 1024 * 1024),
    )(xg, gw_pad)
    scores = scores[:T, :E]

    # top-k routing (data-dependent select) stays in JAX glue.
    topk_w, topk_idx = jax.lax.top_k(scores, top_k)       # (T, k) f32 / int
    if top_k > 1 and norm_topk_prob:
        topk_w = topk_w / (jnp.sum(topk_w, axis=-1, keepdims=True) + 1e-20)

    # --- sort tokens by expert, pad each group to a multiple of tm -----------
    S = T * top_k
    tm = min(tm, _round_up(S, 8))
    ti = _pick_itile(I, ti)
    n_ti = I // ti
    NB = pl.cdiv(S, tm) + min(E, S)          # static upper bound on token tiles
    P = NB * tm

    flat_expert = topk_idx.reshape(-1).astype(jnp.int32)             # (S,)
    flat_w = topk_w.reshape(-1).astype(jnp.float32)                  # (S,)
    # NOTE: jnp.argsort is stable; the within-expert offset math below is
    # order-agnostic anyway, so routing is correct for any sort tie-breaking.
    sort_order = jnp.argsort(flat_expert)                            # (S,)
    sorted_expert = flat_expert[sort_order]                          # (S,)
    token_of = (sort_order // top_k).astype(jnp.int32)               # (S,)

    counts = jnp.bincount(flat_expert, length=E).astype(jnp.int32)   # (E,)
    padded_counts = ((counts + tm - 1) // tm) * tm                   # (E,)
    starts = jnp.cumsum(counts) - counts                             # (E,)
    padded_starts = jnp.cumsum(padded_counts) - padded_counts        # (E,)
    padded_ends = jnp.cumsum(padded_counts)                          # (E,)
    within = jnp.arange(S, dtype=jnp.int32) - starts[sorted_expert]
    dest = (padded_starts[sorted_expert] + within).astype(jnp.int32)  # (S,)

    # expert-sorted, tile-aligned token buffer (padding rows are zeros) and the
    # matching per-row top-k combine scale (padding rows get scale 0).
    x_sorted = jnp.zeros((P, D), x.dtype).at[dest].set(x[token_of])
    scale_sorted = jnp.zeros((P, 1), jnp.float32).at[dest, 0].set(flat_w[sort_order])

    # per-block metadata.  Invalid (fully-padded trailing) blocks form a
    # contiguous tail: clamp their input block indices to the last valid block
    # (no extra DMA) and their output block index to the single trailing trash
    # tile NB-1 (never gathered back), so padded blocks cost no HBM traffic.
    n_used = (jnp.sum(padded_counts) // tm).astype(jnp.int32)
    arange_nb = jnp.arange(NB, dtype=jnp.int32)
    blk_raw = jnp.searchsorted(padded_ends, arange_nb * tm,
                               side="right").astype(jnp.int32)
    blk_raw = jnp.minimum(blk_raw, E - 1)
    valid = arange_nb < n_used
    last_valid = jnp.maximum(n_used - 1, 0)
    block_expert = jnp.where(valid, blk_raw, blk_raw[last_valid]).astype(jnp.int32)
    block_x = jnp.where(valid, arange_nb, last_valid).astype(jnp.int32)
    block_o = jnp.where(valid, arange_nb, NB - 1).astype(jnp.int32)
    block_valid = valid.astype(jnp.int32)

    # --- block-size-derived VMEM budget --------------------------------------
    xsz = jnp.dtype(x.dtype).itemsize
    wsz = jnp.dtype(gate_proj_w.dtype).itemsize
    vmem_est = (2 * (tm * D * xsz            # x tiles (double-buffered)
                     + tm * D * xsz          # output tiles
                     + 3 * D * ti * wsz      # gate/up/down weight tiles
                     + tm * 4)               # scale tiles
                + tm * D * 4                 # f32 accumulator scratch
                + 3 * tm * ti * 4)           # g/u/h live intermediates
    vmem_limit = int(max(32 * 1024 * 1024,
                         min(2 * vmem_est, 96 * 1024 * 1024)))

    # --- routed grouped GEMM (Pallas, scalar-prefetched routing metadata) ----
    y_sorted = pl.pallas_call(
        moe_group_gemm_kernel,
        out_shape=jax.ShapeDtypeStruct((P, D), x.dtype),
        grid_spec=pltpu.PrefetchScalarGridSpec(
            num_scalar_prefetch=4,
            grid=(NB, n_ti),
            in_specs=[
                pl.BlockSpec((tm, D), lambda b, t, be, bv, bx, bo: (bx[b], 0)),
                pl.BlockSpec((tm, 1), lambda b, t, be, bv, bx, bo: (bx[b], 0)),
                pl.BlockSpec((1, ti, D), lambda b, t, be, bv, bx, bo: (be[b], t, 0)),
                pl.BlockSpec((1, ti, D), lambda b, t, be, bv, bx, bo: (be[b], t, 0)),
                pl.BlockSpec((1, D, ti), lambda b, t, be, bv, bx, bo: (be[b], 0, t)),
            ],
            out_specs=pl.BlockSpec((tm, D), lambda b, t, be, bv, bx, bo: (bo[b], 0)),
            scratch_shapes=[pltpu.VMEM((tm, D), jnp.float32)]),
        compiler_params=pltpu.CompilerParams(
            dimension_semantics=("parallel", "arbitrary"),
            vmem_limit_bytes=vmem_limit),
    )(block_expert, block_valid, block_x, block_o,
      x_sorted, scale_sorted, gate_proj_w, up_proj_w, down_proj_w)

    # --- unsort + k-way combine (scale already applied in-kernel) ------------
    inv_rows = jnp.zeros((S,), jnp.int32).at[sort_order].set(dest)
    out_flat = y_sorted[inv_rows]                                    # (S, D)
    out = out_flat.reshape(T, top_k, D).sum(axis=1, dtype=jnp.float32)
    return out.reshape(bsz, seqlen, dim).astype(hidden_states.dtype)


# ----------------------------------------------------------------------------
# Pure-JAX reference for verification (dense per-expert loop).
# ----------------------------------------------------------------------------
def ref_forward(hidden_states, gate_w, gw, uw, dw, *, top_k, norm_topk_prob):
    bsz, seqlen, dim = hidden_states.shape
    x = hidden_states.reshape(-1, dim).astype(jnp.float32)
    E = gw.shape[0]
    scores = jax.nn.softmax(x @ gate_w.T.astype(jnp.float32), axis=-1)
    topk_w, topk_idx = jax.lax.top_k(scores, top_k)
    if top_k > 1 and norm_topk_prob:
        topk_w = topk_w / (jnp.sum(topk_w, axis=-1, keepdims=True) + 1e-20)
    combine = jnp.zeros((x.shape[0], E), jnp.float32).at[
        jnp.arange(x.shape[0])[:, None], topk_idx].add(topk_w)
    out = jnp.zeros_like(x)
    for e in range(E):
        g = x @ gw[e].T.astype(jnp.float32)
        u = x @ uw[e].T.astype(jnp.float32)
        h = jax.nn.silu(g) * u
        out = out + (h @ dw[e].T.astype(jnp.float32)) * combine[:, e:e + 1]
    return out.reshape(bsz, seqlen, dim).astype(hidden_states.dtype)


if __name__ == "__main__":
    # Small config consistent with Qwen3MoeArgs
    bsz, seqlen = 2, 8
    dim, intermediate_dim = 32, 64
    n_experts, top_k = 4, 2
    norm_topk_prob = True

    key = jax.random.PRNGKey(0)
    k0, k1, k2, k3, k4 = jax.random.split(key, 5)
    hidden_states = jax.random.normal(k0, (bsz, seqlen, dim), jnp.float32)
    gate_w = jax.random.normal(k1, (n_experts, dim), jnp.float32) * 0.1
    gate_proj_w = jax.random.normal(k2, (n_experts, intermediate_dim, dim),
                                    jnp.float32) * 0.05
    up_proj_w = jax.random.normal(k3, (n_experts, intermediate_dim, dim),
                                  jnp.float32) * 0.05
    down_proj_w = jax.random.normal(k4, (n_experts, dim, intermediate_dim),
                                    jnp.float32) * 0.05

    # fp32 correctness check against the pure-JAX reference.
    y = feed_forward(hidden_states, gate_w, gate_proj_w, up_proj_w,
                     down_proj_w, top_k=top_k, norm_topk_prob=norm_topk_prob)
    y = jax.block_until_ready(y)
    y_ref = ref_forward(hidden_states, gate_w, gate_proj_w, up_proj_w,
                        down_proj_w, top_k=top_k,
                        norm_topk_prob=norm_topk_prob)
    np.testing.assert_allclose(np.asarray(y), np.asarray(y_ref),
                               rtol=2e-4, atol=2e-5)

    # bf16 (production dtype) path: weights stay bf16 end-to-end, fp32 accum.
    hs_bf16 = hidden_states.astype(jnp.bfloat16)
    gp_bf16 = gate_proj_w.astype(jnp.bfloat16)
    up_bf16 = up_proj_w.astype(jnp.bfloat16)
    dn_bf16 = down_proj_w.astype(jnp.bfloat16)
    y_bf16 = feed_forward(hs_bf16, gate_w, gp_bf16, up_bf16, dn_bf16,
                          top_k=top_k, norm_topk_prob=norm_topk_prob)
    y_bf16 = jax.block_until_ready(y_bf16)
    y_bf16_ref = ref_forward(hs_bf16, gate_w, gp_bf16, up_bf16, dn_bf16,
                             top_k=top_k, norm_topk_prob=norm_topk_prob)
    np.testing.assert_allclose(np.asarray(y_bf16, dtype=np.float32),
                               np.asarray(y_bf16_ref, dtype=np.float32),
                               rtol=2e-2, atol=2e-2)

    print("KERNEL_OK")
</pallas_src>

<mosaic_0001>
module attributes {stable_mosaic.version = 11 : i64} {
  func.func private @main(%arg0: i32) attributes {dimension_semantics = [#tpu.dimension_semantics<core_parallel>], iteration_bounds = array<i64: 2>, tpu.core_type = #tpu.core_type<sc_scalar_subcore>, window_params = []} {
    return
  }
}

module attributes {stable_mosaic.version = 11 : i64} {
  func.func private @main(%arg0: i32) attributes {dimension_semantics = [#tpu.dimension_semantics<core_parallel>], iteration_bounds = array<i64: 2>, tpu.core_type = #tpu.core_type<sc_scalar_subcore>, window_params = []} {
    return
  }
}

module attributes {stable_mosaic.version = 11 : i64} {
  func.func @gate_kernel(%arg0: i32, %arg1: memref<16x32xf32, #tpu.memory_space<vmem>>, %arg2: memref<128x32xf32, #tpu.memory_space<vmem>>, %arg3: memref<16x128xf32, #tpu.memory_space<vmem>>) attributes {dimension_semantics = [#tpu.dimension_semantics<parallel>], iteration_bounds = array<i64: 1>, scalar_prefetch = 0 : i64, scratch_operands = 0 : i64, tpu.core_type = #tpu.core_type<tc>, window_params = [{transform_indices = @transform_0, window_bounds = array<i64: 16, 32>}, {pipeline_mode = #tpu.pipeline_mode<synchronous>, transform_indices = @transform_1, window_bounds = array<i64: 128, 32>}, {transform_indices = @transform_2, window_bounds = array<i64: 16, 128>}]} {
    %c0 = arith.constant 0 : index
    %c0_0 = arith.constant 0 : index
    %0 = vector.load %arg1[%c0, %c0_0] : memref<16x32xf32, #tpu.memory_space<vmem>>, vector<16x32xf32>
    %c0_1 = arith.constant 0 : index
    %c0_2 = arith.constant 0 : index
    %1 = vector.load %arg2[%c0_1, %c0_2] : memref<128x32xf32, #tpu.memory_space<vmem>>, vector<128x32xf32>
    %cst = arith.constant dense<0.000000e+00> : vector<16x128xf32>
    %2 = tpu.matmul %0, %1, %cst {dimension_numbers = #tpu.dot_dimension_numbers<[1], [1], [0], [0], [0, 0, 1, 0], [], []>} : vector<16x32xf32>, vector<128x32xf32>, vector<16x128xf32> -> vector<16x128xf32>
    %3 = tpu.iota {dimensions = array<i32: 1>} : vector<16x128xi32>
    %c4_i32 = arith.constant 4 : i32
    %4 = vector.broadcast %c4_i32 : i32 to vector<16x128xi32>
    %5 = arith.cmpi slt, %3, %4 : vector<16x128xi32>
    %cst_3 = arith.constant 0xFF800000 : f32
    %6 = vector.broadcast %cst_3 : f32 to vector<16x128xf32>
    %7 = arith.select %5, %2, %6 : vector<16x128xi1>, vector<16x128xf32>
    %cst_4 = arith.constant dense<0xFF800000> : vector<16xf32>
    %8 = vector.multi_reduction <maximumf>, %7, %cst_4 [1] : vector<16x128xf32> to vector<16xf32>
    %9 = vector.shape_cast %8 : vector<16xf32> to vector<16x1xf32>
    %10 = vector.broadcast %9 : vector<16x1xf32> to vector<16x128xf32>
    %11 = arith.subf %7, %10 : vector<16x128xf32>
    %12 = math.exp %11 : vector<16x128xf32>
    %cst_5 = arith.constant dense<0.000000e+00> : vector<16xf32>
    %13 = vector.multi_reduction <add>, %12, %cst_5 [1] : vector<16x128xf32> to vector<16xf32>
    %14 = vector.shape_cast %13 : vector<16xf32> to vector<16x1xf32>
    %15 = vector.broadcast %14 : vector<16x1xf32> to vector<16x128xf32>
    %16 = arith.divf %12, %15 : vector<16x128xf32>
    %c0_6 = arith.constant 0 : index
    %c0_7 = arith.constant 0 : index
    %17 = vector.load %arg3[%c0_6, %c0_7] : memref<16x128xf32, #tpu.memory_space<vmem>>, vector<16x128xf32>
    tpu.vector_store %arg3[%c0_6, %c0_7], %16 {strides = array<i32>} : memref<16x128xf32, #tpu.memory_space<vmem>>, vector<16x128xf32>,
    return
  }
  func.func @transform_0(%arg0: i32) -> (i32, i32) {
    %c0_i32 = arith.constant 0 : i32
    %c0_i32_0 = arith.constant 0 : i32
    return %arg0, %c0_i32 : i32, i32
  }
  func.func @transform_1(%arg0: i32) -> (i32, i32) {
    %c0_i32 = arith.constant 0 : i32
    %c0_i32_0 = arith.constant 0 : i32
    %c0_i32_1 = arith.constant 0 : i32
    return %c0_i32, %c0_i32_0 : i32, i32
  }
  func.func @transform_2(%arg0: i32) -> (i32, i32) {
    %c0_i32 = arith.constant 0 : i32
    %c0_i32_0 = arith.constant 0 : i32
    return %arg0, %c0_i32 : i32, i32
  }
}

module attributes {stable_mosaic.version = 11 : i64} {
  func.func @moe_group_gemm_kernel(%arg0: i32, %arg1: i32, %arg2: memref<5xi32, #tpu.memory_space<smem>>, %arg3: memref<5xi32, #tpu.memory_space<smem>>, %arg4: memref<5xi32, #tpu.memory_space<smem>>, %arg5: memref<5xi32, #tpu.memory_space<smem>>, %arg6: memref<32x32xf32, #tpu.memory_space<vmem>>, %arg7: memref<32x1xf32, #tpu.memory_space<vmem>>, %arg8: memref<1x64x32xf32, #tpu.memory_space<vmem>>, %arg9: memref<1x64x32xf32, #tpu.memory_space<vmem>>, %arg10: memref<1x32x64xf32, #tpu.memory_space<vmem>>, %arg11: memref<32x32xf32, #tpu.memory_space<vmem>>, %arg12: memref<32x32xf32, #tpu.memory_space<vmem>>) attributes {dimension_semantics = [#tpu.dimension_semantics<parallel>, #tpu.dimension_semantics<arbitrary>], iteration_bounds = array<i64: 5, 1>, scalar_prefetch = 4 : i64, scratch_operands = 1 : i64, tpu.core_type = #tpu.core_type<tc>, window_params = [{transform_indices = @transform_0, window_bounds = array<i64: 32, 32>}, {transform_indices = @transform_1, window_bounds = array<i64: 32, 1>}, {transform_indices = @transform_2, window_bounds = array<i64: 1, 64, 32>}, {transform_indices = @transform_3, window_bounds = array<i64: 1, 64, 32>}, {transform_indices = @transform_4, window_bounds = array<i64: 1, 32, 64>}, {transform_indices = @transform_5, window_bounds = array<i64: 32, 32>}]} {
    %0 = arith.index_cast %arg0 : i32 to index
    %1 = memref.load %arg3[%0] : memref<5xi32, #tpu.memory_space<smem>>
    %c0_i32 = arith.constant 0 : i32
    %2 = arith.cmpi ne, %1, %c0_i32 : i32
    %3 = arith.extui %2 : i1 to i32
    %c0_i32_0 = arith.constant 0 : i32
    %4 = arith.cmpi ne, %3, %c0_i32_0 : i32
    scf.if %4 {
      %c0_i32_1 = arith.constant 0 : i32
      %5 = arith.cmpi eq, %arg1, %c0_i32_1 : i32
      %6 = arith.extui %5 : i1 to i32
      %c0_i32_2 = arith.constant 0 : i32
      %7 = arith.cmpi ne, %6, %c0_i32_2 : i32
      scf.if %7 {
        %cst_22 = arith.constant 0.000000e+00 : f32
        %31 = vector.broadcast %cst_22 : f32 to vector<32x32xf32>
        %c0_23 = arith.constant 0 : index
        %c0_24 = arith.constant 0 : index
        %32 = vector.load %arg12[%c0_23, %c0_24] : memref<32x32xf32, #tpu.memory_space<vmem>>, vector<32x32xf32>
        tpu.vector_store %arg12[%c0_23, %c0_24], %31 {strides = array<i32>} : memref<32x32xf32, #tpu.memory_space<vmem>>, vector<32x32xf32>,
      } else {
      }
      %c0 = arith.constant 0 : index
      %c0_3 = arith.constant 0 : index
      %8 = vector.load %arg6[%c0, %c0_3] : memref<32x32xf32, #tpu.memory_space<vmem>>, vector<32x32xf32>
      %c0_4 = arith.constant 0 : index
      %c0_5 = arith.constant 0 : index
      %c0_6 = arith.constant 0 : index
      %9 = vector.load %arg8[%c0_4, %c0_5, %c0_6] : memref<1x64x32xf32, #tpu.memory_space<vmem>>, vector<1x64x32xf32>
      %10 = vector.shape_cast %9 : vector<1x64x32xf32> to vector<64x32xf32>
      %c0_7 = arith.constant 0 : index
      %c0_8 = arith.constant 0 : index
      %c0_9 = arith.constant 0 : index
      %11 = vector.load %arg9[%c0_7, %c0_8, %c0_9] : memref<1x64x32xf32, #tpu.memory_space<vmem>>, vector<1x64x32xf32>
      %12 = vector.shape_cast %11 : vector<1x64x32xf32> to vector<64x32xf32>
      %c0_10 = arith.constant 0 : index
      %c0_11 = arith.constant 0 : index
      %c0_12 = arith.constant 0 : index
      %13 = vector.load %arg10[%c0_10, %c0_11, %c0_12] : memref<1x32x64xf32, #tpu.memory_space<vmem>>, vector<1x32x64xf32>
      %14 = vector.shape_cast %13 : vector<1x32x64xf32> to vector<32x64xf32>
      %cst = arith.constant dense<0.000000e+00> : vector<32x64xf32>
      %15 = tpu.matmul %8, %10, %cst {dimension_numbers = #tpu.dot_dimension_numbers<[1], [1], [0], [0], [0, 0, 1, 0], [], []>} : vector<32x32xf32>, vector<64x32xf32>, vector<32x64xf32> -> vector<32x64xf32>
      %cst_13 = arith.constant dense<0.000000e+00> : vector<32x64xf32>
      %16 = tpu.matmul %8, %12, %cst_13 {dimension_numbers = #tpu.dot_dimension_numbers<[1], [1], [0], [0], [0, 0, 1, 0], [], []>} : vector<32x32xf32>, vector<64x32xf32>, vector<32x64xf32> -> vector<32x64xf32>
      %17 = arith.negf %15 : vector<32x64xf32>
      %18 = math.exp %17 : vector<32x64xf32>
      %cst_14 = arith.constant 1.000000e+00 : f32
      %19 = vector.broadcast %cst_14 : f32 to vector<32x64xf32>
      %20 = arith.addf %19, %18 : vector<32x64xf32>
      %21 = arith.divf %19, %20 : vector<32x64xf32>
      %22 = arith.mulf %15, %21 : vector<32x64xf32>
      %23 = arith.mulf %22, %16 : vector<32x64xf32>
      %c0_15 = arith.constant 0 : index
      %c0_16 = arith.constant 0 : index
      %24 = vector.load %arg12[%c0_15, %c0_16] : memref<32x32xf32, #tpu.memory_space<vmem>>, vector<32x32xf32>
      %cst_17 = arith.constant dense<0.000000e+00> : vector<32x32xf32>
      %25 = tpu.matmul %23, %14, %cst_17 {dimension_numbers = #tpu.dot_dimension_numbers<[1], [1], [0], [0], [0, 0, 1, 0], [], []>} : vector<32x64xf32>, vector<32x64xf32>, vector<32x32xf32> -> vector<32x32xf32>
      %26 = arith.addf %24, %25 : vector<32x32xf32>
      %c0_18 = arith.constant 0 : index
      %c0_19 = arith.constant 0 : index
      %27 = vector.load %arg12[%c0_18, %c0_19] : memref<32x32xf32, #tpu.memory_space<vmem>>, vector<32x32xf32>
      tpu.vector_store %arg12[%c0_18, %c0_19], %26 {strides = array<i32>} : memref<32x32xf32, #tpu.memory_space<vmem>>, vector<32x32xf32>,
      %c0_i32_20 = arith.constant 0 : i32
      %28 = arith.cmpi eq, %arg1, %c0_i32_20 : i32
      %29 = arith.extui %28 : i1 to i32
      %c0_i32_21 = arith.constant 0 : i32
      %30 = arith.cmpi ne, %29, %c0_i32_21 : i32
      scf.if %30 {
        %c0_22 = arith.constant 0 : index
        %c0_23 = arith.constant 0 : index
        %31 = vector.load %arg12[%c0_22, %c0_23] : memref<32x32xf32, #tpu.memory_space<vmem>>, vector<32x32xf32>
        %c0_24 = arith.constant 0 : index
        %c0_25 = arith.constant 0 : index
        %32 = vector.load %arg7[%c0_24, %c0_25] : memref<32x1xf32, #tpu.memory_space<vmem>>, vector<32x1xf32>
        %33 = vector.broadcast %32 : vector<32x1xf32> to vector<32x32xf32>
        %34 = arith.mulf %31, %33 : vector<32x32xf32>
        %c0_26 = arith.constant 0 : index
        %c0_27 = arith.constant 0 : index
        %35 = vector.load %arg11[%c0_26, %c0_27] : memref<32x32xf32, #tpu.memory_space<vmem>>, vector<32x32xf32>
        tpu.vector_store %arg11[%c0_26, %c0_27], %34 {strides = array<i32>} : memref<32x32xf32, #tpu.memory_space<vmem>>, vector<32x32xf32>,
      } else {
      }
    } else {
    }
    return
  }
  func.func @transform_0(%arg0: i32, %arg1: i32, %arg2: memref<5xi32, #tpu.memory_space<smem>>, %arg3: memref<5xi32, #tpu.memory_space<smem>>, %arg4: memref<5xi32, #tpu.memory_space<smem>>, %arg5: memref<5xi32, #tpu.memory_space<smem>>) -> (i32, i32) {
    %0 = arith.index_cast %arg0 : i32 to index
    %1 = memref.load %arg4[%0] : memref<5xi32, #tpu.memory_space<smem>>
    %c0_i32 = arith.constant 0 : i32
    %c0_i32_0 = arith.constant 0 : i32
    return %1, %c0_i32 : i32, i32
  }
  func.func @transform_1(%arg0: i32, %arg1: i32, %arg2: memref<5xi32, #tpu.memory_space<smem>>, %arg3: memref<5xi32, #tpu.memory_space<smem>>, %arg4: memref<5xi32, #tpu.memory_space<smem>>, %arg5: memref<5xi32, #tpu.memory_space<smem>>) -> (i32, i32) {
    %0 = arith.index_cast %arg0 : i32 to index
    %1 = memref.load %arg4[%0] : memref<5xi32, #tpu.memory_space<smem>>
    %c0_i32 = arith.constant 0 : i32
    %c0_i32_0 = arith.constant 0 : i32
    return %1, %c0_i32 : i32, i32
  }
  func.func @transform_2(%arg0: i32, %arg1: i32, %arg2: memref<5xi32, #tpu.memory_space<smem>>, %arg3: memref<5xi32, #tpu.memory_space<smem>>, %arg4: memref<5xi32, #tpu.memory_space<smem>>, %arg5: memref<5xi32, #tpu.memory_space<smem>>) -> (i32, i32, i32) {
    %0 = arith.index_cast %arg0 : i32 to index
    %1 = memref.load %arg2[%0] : memref<5xi32, #tpu.memory_space<smem>>
    %c0_i32 = arith.constant 0 : i32
    %c0_i32_0 = arith.constant 0 : i32
    return %1, %arg1, %c0_i32 : i32, i32, i32
  }
  func.func @transform_3(%arg0: i32, %arg1: i32, %arg2: memref<5xi32, #tpu.memory_space<smem>>, %arg3: memref<5xi32, #tpu.memory_space<smem>>, %arg4: memref<5xi32, #tpu.memory_space<smem>>, %arg5: memref<5xi32, #tpu.memory_space<smem>>) -> (i32, i32, i32) {
    %0 = arith.index_cast %arg0 : i32 to index
    %1 = memref.load %arg2[%0] : memref<5xi32, #tpu.memory_space<smem>>
    %c0_i32 = arith.constant 0 : i32
    %c0_i32_0 = arith.constant 0 : i32
    return %1, %arg1, %c0_i32 : i32, i32, i32
  }
  func.func @transform_4(%arg0: i32, %arg1: i32, %arg2: memref<5xi32, #tpu.memory_space<smem>>, %arg3: memref<5xi32, #tpu.memory_space<smem>>, %arg4: memref<5xi32, #tpu.memory_space<smem>>, %arg5: memref<5xi32, #tpu.memory_space<smem>>) -> (i32, i32, i32) {
    %0 = arith.index_cast %arg0 : i32 to index
    %1 = memref.load %arg2[%0] : memref<5xi32, #tpu.memory_space<smem>>
    %c0_i32 = arith.constant 0 : i32
    %c0_i32_0 = arith.constant 0 : i32
    return %1, %c0_i32, %arg1 : i32, i32, i32
  }
  func.func @transform_5(%arg0: i32, %arg1: i32, %arg2: memref<5xi32, #tpu.memory_space<smem>>, %arg3: memref<5xi32, #tpu.memory_space<smem>>, %arg4: memref<5xi32, #tpu.memory_space<smem>>, %arg5: memref<5xi32, #tpu.memory_space<smem>>) -> (i32, i32) {
    %0 = arith.index_cast %arg0 : i32 to index
    %1 = memref.load %arg5[%0] : memref<5xi32, #tpu.memory_space<smem>>
    %c0_i32 = arith.constant 0 : i32
    %c0_i32_0 = arith.constant 0 : i32
    return %1, %c0_i32 : i32, i32
  }
}

</mosaic_0001>

<bundles_post_ra>
// kernel: custom-call
= control target key start
LH: loop header
LB: loop body
LE: loop exit
PB: predicated region body
PF: predicated region fallthrough
CT: control target
= control target key end

     0   :  { %s6_s0 = inlined_call_operand.vmem [shape: u32[5], index: 0, kind: output, shape index: {}]  }

// kernel: feed_forward.2
= control target key start
LH: loop header
LB: loop body
LE: loop exit
PB: predicated region body
PF: predicated region fallthrough
CT: control target
= control target key end

     0   :  { %vm29_vm0 = vcmask 261120   ;;  %v159_v18 = vlaneseq  ;;  %s376_s1 = inlined_call_operand.vmem [shape: f32[128,32], index: 1, kind: input, shape index: {}]   ;;  %s377_s0 = inlined_call_operand.vmem [shape: f32[16,32], index: 0, kind: input, shape index: {}]   ;;  %s378_s2 = inlined_call_operand.vmem [shape: f32[16,128], index: 2, kind: output, shape index: {}]  }
   0x1   :  { %v28_v0 = vld [vmem:[%s376_s1 + $0x78] sm:$0xff]  ;;  %v27_v1 = vld [vmem:[%s376_s1 + $0x70] sm:$0xff]  ;;  %v26_v2 = vld [vmem:[%s376_s1 + $0x68] sm:$0xff] }
   0x2   :  { %224 = vmatprep.subr.msk.mxu0 %vm29_vm0, %v28_v0  ;;  %v11_v3 = vld [vmem:[%s377_s0] sm:$0xff]  ;;  %v24_v5 = vld [vmem:[%s376_s1 + $0x58] sm:$0xff]  ;;  %v23_v6 = vld [vmem:[%s376_s1 + $0x50] sm:$0xff]  ;;  %v160_v19 = vand.u32 127, %v159_v18 }
   0x3   :  { %225 = vmatpush3.xpose.msk.msra.mxu0 %vm29_vm0, %v28_v0  ;;  %256 = vmatprep.mubr.msk.f32.mxu0 %vm29_vm0, %v11_v3  ;;  %v25_v4 = vld [vmem:[%s376_s1 + $0x60] sm:$0xff]  ;;  %v22_v7 = vld [vmem:[%s376_s1 + $0x48] sm:$0xff]  ;;  %v20_v9 = vld [vmem:[%s376_s1 + $0x38] sm:$0xff] }
   0x4   :  { %226 = vmatprep.subr.msk.mxu0 %vm29_vm0, %v27_v1  ;;  %v21_v8 = vld [vmem:[%s376_s1 + $0x40] sm:$0xff]  ;;  %v19_v10 = vld [vmem:[%s376_s1 + $0x30] sm:$0xff]  ;;  %v18_v11 = vld [vmem:[%s376_s1 + $0x28] sm:$0xff]  ;;  %vm161_vm1 = vcmp.lt.s32.totalorder %v160_v19, 4 }
   0x5   :  { %v17_v12 = vld [vmem:[%s376_s1 + $0x20] sm:$0xff]  ;;  %v16_v13 = vld [vmem:[%s376_s1 + $0x18] sm:$0xff]  ;;  %v15_v14 = vld [vmem:[%s376_s1 + $0x10] sm:$0xff] }
   0x6   :  { %v14_v15 = vld [vmem:[%s376_s1 + $0x8] sm:$0xff]  ;;  %v13_v16 = vld [vmem:[%s376_s1] sm:$0xff] }
   0x7   :  { %227 = vmatpush3.xpose.msk.msra.mxu0 %vm29_vm0, %v27_v1  ;;  %v12_v17 = vld [vmem:[%s377_s0 + $0x8] sm:$0xff] }
   0x8   :  { %228 = vmatprep.subr.msk.mxu0 %vm29_vm0, %v26_v2 }
   0xb   :  { %229 = vmatpush3.xpose.msk.msra.mxu0 %vm29_vm0, %v26_v2 }
   0xc   :  { %230 = vmatprep.subr.msk.mxu0 %vm29_vm0, %v25_v4 }
   0xf   :  { %231 = vmatpush3.xpose.msk.msra.mxu0 %vm29_vm0, %v25_v4 }
  0x10   :  { %232 = vmatprep.subr.msk.mxu0 %vm29_vm0, %v24_v5 }
  0x13   :  { %233 = vmatpush3.xpose.msk.msra.mxu0 %vm29_vm0, %v24_v5 }
  0x14   :  { %234 = vmatprep.subr.msk.mxu0 %vm29_vm0, %v23_v6 }
  0x17   :  { %235 = vmatpush3.xpose.msk.msra.mxu0 %vm29_vm0, %v23_v6 }
  0x18   :  { %236 = vmatprep.subr.msk.mxu0 %vm29_vm0, %v22_v7 }
  0x1b   :  { %237 = vmatpush3.xpose.msk.msra.mxu0 %vm29_vm0, %v22_v7 }
  0x1c   :  { %238 = vmatprep.subr.msk.mxu0 %vm29_vm0, %v21_v8 }
  0x1f   :  { %239 = vmatpush3.xpose.msk.msra.mxu0 %vm29_vm0, %v21_v8 }
  0x20   :  { %240 = vmatprep.subr.msk.mxu0 %vm29_vm0, %v20_v9 }
  0x23   :  { %241 = vmatpush3.xpose.msk.msra.mxu0 %vm29_vm0, %v20_v9 }
  0x24   :  { %242 = vmatprep.subr.msk.mxu0 %vm29_vm0, %v19_v10 }
  0x27   :  { %243 = vmatpush3.xpose.msk.msra.mxu0 %vm29_vm0, %v19_v10 }
  0x28   :  { %244 = vmatprep.subr.msk.mxu0 %vm29_vm0, %v18_v11 }
  0x2b   :  { %245 = vmatpush3.xpose.msk.msra.mxu0 %vm29_vm0, %v18_v11 }
  0x2c   :  { %246 = vmatprep.subr.msk.mxu0 %vm29_vm0, %v17_v12 }
  0x2f   :  { %247 = vmatpush3.xpose.msk.msra.mxu0 %vm29_vm0, %v17_v12 }
  0x30   :  { %248 = vmatprep.subr.msk.mxu0 %vm29_vm0, %v16_v13 }
  0x33   :  { %249 = vmatpush3.xpose.msk.msra.mxu0 %vm29_vm0, %v16_v13 }
  0x34   :  { %250 = vmatprep.subr.msk.mxu0 %vm29_vm0, %v15_v14 }
  0x37   :  { %251 = vmatpush3.xpose.msk.msra.mxu0 %vm29_vm0, %v15_v14 }
  0x38   :  { %252 = vmatprep.subr.msk.mxu0 %vm29_vm0, %v14_v15 }
  0x3b   :  { %253 = vmatpush3.xpose.msk.msra.mxu0 %vm29_vm0, %v14_v15 }
  0x3c   :  { %254 = vmatprep.subr.msk.mxu0 %vm29_vm0, %v13_v16 }
  0x3f   :  { %255 = vmatpush3.xpose.msk.msra.mxu0 %vm29_vm0, %v13_v16 }
  0x42   :  { %257 = vmatmul.mubr.msk.f32.vlgmr.msra.gmra.mxu0 %vm29_vm0, %v12_v17 }
 0x102   :  { %v258_v20 = vpop.f32.mrf.mxu0 }
 0x103   :  { %v163_v23 = vsel %vm161_vm1, %v258_v20, -inf }
 0x104   :  { %v150_v21 = vpop.f32.mrf.mxu0 }
 0x105   :  { %v162_v22 = vsel %vm161_vm1, %v150_v21, -inf }
 0x106   :  { %164 = vmax.xlane.f32.xlu0 %v162_v22 }
 0x10a   :  { %166 = vmax.xlane.f32.xlu0 %v163_v23 }
 0x18f   :  { %v165_v24 = vpop.xlane.xlu0 %164 }
 0x190   :  { %v168_v25 = vsub.f32 %v162_v22, %v165_v24 }
 0x192   :  { %v170_v26 = vmul.f32 1.442695, %v168_v25 }
 0x193   :  { %v167_v27 = vpop.xlane.xlu0 %166 }
 0x194   :  { %259 = vpow2.f32 %v170_v26  ;;  %v169_v28 = vsub.f32 %v163_v23, %v167_v27 }
 0x196   :  { %v172_v29 = vmul.f32 1.442695, %v169_v28 }
 0x198   :  { %261 = vpow2.f32 %v172_v29 }
 0x1a1   :  { %v260_v30 = vpop.eup %259 }
 0x1a2   :  { %174 = vadd.xlane.f32.xlu1 %v260_v30 }
 0x1a5   :  { %v262_v31 = vpop.eup %261 }
 0x1a6   :  { %176 = vadd.xlane.f32.xlu1 %v262_v31 }
 0x22b   :  { %v175_v32 = vpop.xlane.xlu1 %174 }
 0x22c   :  { %263 = vrcp.f32 %v175_v32 }
 0x22f   :  { %v177_v33 = vpop.xlane.xlu1 %176 }
 0x230   :  { %265 = vrcp.f32 %v177_v33 }
 0x239   :  { %v264_v34 = vpop.eup %263 }
 0x23a   :  { %v179_v35 = vmul.f32 %v264_v34, %v260_v30 }
 0x23c   :  { %182 = vst [vmem:[%s378_s2] sm:$0xff] %v179_v35 }
 0x23d   :  { %v266_v36 = vpop.eup %265 }
 0x23e   :  { %v181_v37 = vmul.f32 %v266_v36, %v262_v31 }
 0x240   :  { %183 = vst [vmem:[%s378_s2 + $0x8] sm:$0xff] %v181_v37 }

// kernel: feed_forward.3
= control target key start
LH: loop header
LB: loop body
LE: loop exit
PB: predicated region body
PF: predicated region fallthrough
CT: control target
= control target key end

     0   :  { %s1531_s0 = inlined_call_operand.vmem [shape: s32[5], index: 0, kind: input, shape index: {}]   ;;  %s1532_s4 = inlined_call_operand.vmem [shape: f32[160,32], index: 4, kind: input, shape index: {}]   ;;  %s1533_s5 = inlined_call_operand.vmem [shape: f32[160,1], index: 5, kind: input, shape index: {}]   ;;  %s1534_s6 = inlined_call_operand.vmem [shape: f32[4,64,32], index: 6, kind: input, shape index: {}]   ;;  %s1535_s7 = inlined_call_operand.vmem [shape: f32[4,64,32], index: 7, kind: input, shape index: {}]   ;;  %s1536_s8 = inlined_call_operand.vmem [shape: f32[4,32,64], index: 8, kind: input, shape index: {}]   ;;  %s1537_s9 = inlined_call_operand.vmem [shape: f32[160,32], index: 9, kind: output, shape index: {}]   ;;  %s1538_s1 = inlined_call_operand.vmem [shape: s32[5], index: 1, kind: input, shape index: {}]   ;;  %s1539_s2 = inlined_call_operand.vmem [shape: s32[5], index: 2, kind: input, shape index: {}]   ;;  %s1540_s3 = inlined_call_operand.vmem [shape: s32[5], index: 3, kind: input, shape index: {}]  }
   0x1   :  { %s14_s11 = sshll.u32 %s1531_s0, 4  ;;  %s18_s14 = sshll.u32 %s1538_s1, 4  ;;  %s15_s11 = int_to_ptr.vmem [resolvable:$true] %s14_s11  ;;  %s19_s14 = int_to_ptr.vmem [resolvable:$true] %s18_s14 }
   0x2   :  { %s1228_s15 = scalar_lea.vmem %s15_s11, 16  ;;  %p1233_p1 = scmp.lt.s32.totalorder %s15_s11, %s15_s11 }
   0x3   :  { %p1229_p0 = scmp.ne.s32.totalorder %s15_s11, %s1228_s15  ;;  %p1234_p2 = scmp.lt.s32.totalorder %s1228_s15, %s1228_s15 }
   0x5   :  { %p1235_p3 = por %p1234_p2, %p1233_p1 }
   0x7   :  { %p1236_p4 = pnand %p1235_p3, %p1229_p0 }
   0x9   :  { %1239 = shalt.err (!%p1236_p4)  }
   0xa   :  { %s1302_s16 = smov [#allocation4]   ;;  %s1240_s17 = scalar_lea.vmem %s19_s14, 16 }
   0xb   :  { %17 = dma.vmem_to_smem %s15_s11, 16, %s1302_s16, [#allocation3] }
   0xc   :  { %p1241_p5 = scmp.ne.s32.totalorder %s19_s14, %s1240_s17  ;;  %p1245_p6 = scmp.lt.s32.totalorder %s19_s14, %s19_s14 }
   0xd   :  { %p1246_p7 = scmp.lt.s32.totalorder %s1240_s17, %s1240_s17 }
   0xf   :  { %p1247_p8 = por %p1246_p7, %p1245_p6 }
  0x11   :  { %p1248_p9 = pnand %p1247_p8, %p1241_p5 }
  0x13   :  { %1251 = shalt.err (!%p1248_p9)  }
  0x14   :  { %s1303_s0 = smov [#allocation5]   ;;  %s22_s19 = sshll.u32 %s1539_s2, 4  ;;  %s23_s19 = int_to_ptr.vmem [resolvable:$true] %s22_s19 }
  0x15   :  { %21 = dma.vmem_to_smem %s19_s14, 16, %s1303_s0, [#allocation3] }
  0x16   :  { %s26_s22 = sshll.u32 %s1540_s3, 4  ;;  %s1252_s23 = scalar_lea.vmem %s23_s19, 16  ;;  %s27_s22 = int_to_ptr.vmem [resolvable:$true] %s26_s22 }
  0x17   :  { %p1253_p10 = scmp.ne.s32.totalorder %s23_s19, %s1252_s23  ;;  %p1257_p11 = scmp.lt.s32.totalorder %s23_s19, %s23_s19 }
  0x18   :  { %p1258_p12 = scmp.lt.s32.totalorder %s1252_s23, %s1252_s23 }
  0x1a   :  { %p1259_p13 = por %p1258_p12, %p1257_p11 }
  0x1c   :  { %p1260_p0 = pnand %p1259_p13, %p1253_p10 }
  0x1e   :  { %1263 = shalt.err (!%p1260_p0)  }
  0x1f   :  { %s1304_s24 = smov [#allocation6]   ;;  %s1264_s25 = scalar_lea.vmem %s27_s22, 16 }
  0x20   :  { %25 = dma.vmem_to_smem %s23_s19, 16, %s1304_s24, [#allocation3] }
  0x21   :  { %p1265_p1 = scmp.ne.s32.totalorder %s27_s22, %s1264_s25  ;;  %p1269_p2 = scmp.lt.s32.totalorder %s27_s22, %s27_s22 }
  0x22   :  { %p1270_p3 = scmp.lt.s32.totalorder %s1264_s25, %s1264_s25 }
  0x24   :  { %p1271_p4 = por %p1270_p3, %p1269_p2 }
  0x26   :  { %p1272_p5 = pnand %p1271_p4, %p1265_p1 }
  0x28   :  { %1275 = shalt.err (!%p1272_p5)  }
  0x29   :  { %s1305_s2 = smov [#allocation7]  }
  0x2a   :  { %29 = dma.vmem_to_smem %s27_s22, 16, %s1305_s2, [#allocation3] }
  0x2b   :  { %1288 = dma.done.wait [#allocation3], 64 }
  0x2c   :  { %1289 = vsyncadd [#allocation3], 4294967232 }
  0x2d   :  { %31 = sfence }
  0x2e   :  { %s1370_s3 = smov 0   ;;  %s1372_s26 = smov 0  }
  0x2f   :  { %s1374_s27 = smov 0  }
  0x30 LB: > { %s49_s28 = sadd.s32 1, %s1296_s26  ;;  %p1027_p6 = scmp.ge.s32.totalorder %s1300_s27, 1  ;;  %s1300_s27 = sphi %s1374_s27, %s37_s27   ;;  %s1296_s26 = sphi %s1372_s26, %s1542_s26   ;;  %s1292_s3 = sphi %s1370_s3, %s1541_s3  }
  0x31   : > { %p51_p7 = scmp.ge.s32.totalorder %s49_s28, 5  ;;  %p304_p8 = scmp.lt.s32.totalorder %s1300_s27, 6 }
  0x33   : > { %s1544_s28 = smov (%p51_p7, %s49_s28), 0  ;;  %p305_p9 = pnand %p1027_p6, %p304_p8 }
  0x34   : > { %s369_s29 = sld [smem:[#allocation6 + %s1292_s3]] (!%p305_p9) }
  0x35   : > { %308 = sbr.rel (%p305_p9) target bundleno = 554 (0x22a), region = 40  ;;  %s377_s30 = sld [smem:[#allocation6 + %s1292_s3]] (!%p305_p9) }
  0x36   : > { %s385_s10 = sld [smem:[#allocation4 + %s1292_s3]] (!%p305_p9) }
  0x37   : > { %s397_s11 = sld [smem:[#allocation4 + %s1292_s3]] (!%p305_p9) }
  0x38   : > { %s409_s12 = sld [smem:[#allocation4 + %s1292_s3]] (!%p305_p9) }
  0x39   : > { %s419_s13 = sld [smem:[#allocation7 + %s1292_s3]] (!%p305_p9) }
  0x3a   : > { %s1028_s14 = sshll.u32 %s369_s29, 2  ;;  %s427_s15 = sld [smem:[#allocation5 + %s1292_s3]] }
  0x3b   : > { %p371_p10 = scmp.lt.s32.totalorder %s1028_s14, 19  ;;  %s1030_s16 = sshll.u32 %s377_s30, 2 }
  0x3c   : > { %p379_p11 = scmp.lt.s32.totalorder %s1030_s16, 19  ;;  %p387_p12 = scmp.lt.s32.totalorder %s385_s10, 3 }
  0x3d   : > { %s1546_s14 = smov (!%p371_p10, %s1028_s14), 19  ;;  %p399_p13 = scmp.lt.s32.totalorder %s397_s11, 3 }
  0x3e   : > { %s1548_s16 = smov (!%p379_p11, %s1030_s16), 19  ;;  %s1029_s17 = sshll.u32 %s1546_s14, 3 }
  0x3f   : > { %s1391_s18 = scalar_lea.vmem %s1532_s4, %s1029_s17  ;;  %s1031_s19 = sshll.u32 %s1548_s16, 3 }
  0x40   : > { %s1396_s22 = scalar_lea.vmem %s1533_s5, %s1031_s19  ;;  %p410_p0 = scmp.lt.s32.totalorder %s409_s12, 3 }
  0x41   : > { %s1550_s10 = smov (!%p387_p12, %s385_s10), 3  ;;  %s1552_s11 = smov (!%p399_p13, %s397_s11), 3 }
  0x42   : > { %s1079_s23 = sshll.u32 %s1550_s10, 6  ;;  %s1038_s24 = sshll.u32 %s419_s13, 2 }
  0x43   : > { %s1401_s3 = scalar_lea.vmem %s1534_s6, %s1079_s23  ;;  %s1080_s29 = sshll.u32 %s1552_s11, 6 }
  0x44   : > { %s1406_s16 = scalar_lea.vmem %s1535_s7, %s1080_s29  ;;  %p421_p1 = scmp.lt.s32.totalorder %s1038_s24, 19 }
  0x45   : > { %s1554_s12 = smov (!%p410_p0, %s409_s12), 3  ;;  %p1040_p2 = scmp.eq.s32.totalorder %s427_s15, 0 }
  0x46   : > { %s1556_s24 = smov (!%p421_p1, %s1038_s24), 19  ;;  %s1081_s17 = sshll.u32 %s1554_s12, 5 }
  0x47   : > { %s1411_s10 = scalar_lea.vmem %s1536_s8, %s1081_s17  ;;  %s1039_s13 = sshll.u32 %s1556_s24, 3 }
  0x48   : > { %s1416_s21 = scalar_lea.vmem %s1537_s9, %s1039_s13  ;;  %431 = sbr.rel (%p1040_p2) target bundleno = 554 (0x22a), region = 44 }
  0x4d   : > { %vm436_vm0 = vcmask 261120   ;;  %v452_v0 = vld [vmem:[%s1401_s3 + $0x38] sm:$0xff]  ;;  %v451_v1 = vld [vmem:[%s1401_s3 + $0x30] sm:$0xff]  ;;  %v441_v2 = vld [vmem:[%s1391_s18] sm:$0xff]  ;;  %vm732_vm1 = vcmask 523264   ;;  %v1306_v26 = vmov 0  }
  0x4e   : > { %1114 = vmatprep.subr.msk.mxu0 %vm436_vm0, %v452_v0  ;;  %1130 = vmatprep.mubr.msk.f32.mxu0 %vm436_vm0, %v441_v2  ;;  %v460_v3 = vld [vmem:[%s1406_s16 + $0x38] sm:$0xff]  ;;  %v450_v4 = vld [vmem:[%s1401_s3 + $0x28] sm:$0xff]  ;;  %v459_v5 = vld [vmem:[%s1406_s16 + $0x30] sm:$0xff]  ;;  %v1307_v27 = vmov 0.0  }
  0x4f   : > { %1115 = vmatpush3.xpose.msk.msra.mxu0 %vm436_vm0, %v452_v0  ;;  %1136 = vmatprep.subr.msk.mxu1 %vm436_vm0, %v460_v3  ;;  %v458_v6 = vld [vmem:[%s1406_s16 + $0x28] sm:$0xff]  ;;  %v449_v7 = vld [vmem:[%s1401_s3 + $0x20] sm:$0xff]  ;;  %v448_v9 = vld [vmem:[%s1401_s3 + $0x18] sm:$0xff]  ;;  %438 = vst.msk [vmem:[#allocation2 + $0x8] sm:$0xff] %vm436_vm0, %v1307_v27 }
  0x50   : > { %1116 = vmatprep.subr.msk.mxu0 %vm436_vm0, %v451_v1  ;;  %1152 = vmatprep.mubr.msk.f32.mxu1 %vm436_vm0, %v441_v2  ;;  %v457_v8 = vld [vmem:[%s1406_s16 + $0x20] sm:$0xff]  ;;  %v456_v10 = vld [vmem:[%s1406_s16 + $0x18] sm:$0xff]  ;;  %v447_v11 = vld [vmem:[%s1401_s3 + $0x10] sm:$0xff]  ;;  %437 = vst.msk [vmem:[#allocation2] sm:$0xff] %vm436_vm0, %v1307_v27 }
  0x51   : > { %1137 = vmatpush3.xpose.msk.msra.mxu1 %vm436_vm0, %v460_v3  ;;  %v455_v12 = vld [vmem:[%s1406_s16 + $0x10] sm:$0xff]  ;;  %v446_v13 = vld [vmem:[%s1401_s3 + $0x8] sm:$0xff]  ;;  %v445_v15 = vld [vmem:[%s1401_s3] sm:$0xff]  ;;  %1210 = vset.pattern.permute.xlu0 %v1306_v26  ;;  %439 = vst.msk [vmem:[#allocation2 + $0x10] sm:$0xff] %vm436_vm0, %v1307_v27 }
  0x52   : > { %1138 = vmatprep.subr.msk.mxu1 %vm436_vm0, %v459_v5  ;;  %v454_v14 = vld [vmem:[%s1406_s16 + $0x8] sm:$0xff]  ;;  %v453_v16 = vld [vmem:[%s1406_s16] sm:$0xff]  ;;  %v443_v18 = vld [vmem:[%s1391_s18 + $0x10] sm:$0xff]  ;;  %1211 = vset.pattern.permute.xlu1 %v1306_v26  ;;  %440 = vst.msk [vmem:[#allocation2 + $0x18] sm:$0xff] %vm436_vm0, %v1307_v27 }
  0x53   : > { %1117 = vmatpush3.xpose.msk.msra.mxu0 %vm436_vm0, %v451_v1  ;;  %v442_v17 = vld [vmem:[%s1391_s18 + $0x8] sm:$0xff]  ;;  %v444_v19 = vld [vmem:[%s1391_s18 + $0x18] sm:$0xff]  ;;  %v463_v21 = vld [vmem:[%s1411_s10 + $0x10] sm:$0xff] }
  0x54   : > { %1118 = vmatprep.subr.msk.mxu0 %vm436_vm0, %v450_v4  ;;  %v464_v20 = vld [vmem:[%s1411_s10 + $0x18] sm:$0xff]  ;;  %v462_v22 = vld [vmem:[%s1411_s10 + $0x8] sm:$0xff]  ;;  %v461_v23 = vld [vmem:[%s1411_s10] sm:$0xff] }
  0x55   : > { %1139 = vmatpush3.xpose.msk.msra.mxu1 %vm436_vm0, %v459_v5  ;;  %v857_v24 = vld [vmem:[%s1396_s22] sm:$0xff]  ;;  %v859_v25 = vld [vmem:[%s1396_s22 + $0x10] sm:$0xff]  ;;  %v858_v28 = vld [vmem:[%s1396_s22 + $0x8] sm:$0xff] }
  0x56   : > { %1140 = vmatprep.subr.msk.mxu1 %vm436_vm0, %v458_v6  ;;  %863 = vperm.xlu0 %1210, %v857_v24   ;;  %v860_v29 = vld [vmem:[%s1396_s22 + $0x18] sm:$0xff]  ;;  %v729_v62 = vld [vmem:[#allocation2 + $0x8] sm:$0xff] }
  0x57   : > { %1119 = vmatpush3.xpose.msk.msra.mxu0 %vm436_vm0, %v450_v4  ;;  %873 = vperm.xlu1 %1211, %v859_v25   ;;  %v728_v0 = vld [vmem:[#allocation2] sm:$0xff] }
  0x58   : > { %1120 = vmatprep.subr.msk.mxu0 %vm436_vm0, %v449_v7 }
  0x59   : > { %1141 = vmatpush3.xpose.msk.msra.mxu1 %vm436_vm0, %v458_v6  ;;  %v731_v3 = vld [vmem:[#allocation2 + $0x18] sm:$0xff] }
  0x5a   : > { %1142 = vmatprep.subr.msk.mxu1 %vm436_vm0, %v457_v8  ;;  %868 = vperm.xlu0 %1210, %v858_v28  }
  0x5b   : > { %1121 = vmatpush3.xpose.msk.msra.mxu0 %vm436_vm0, %v449_v7  ;;  %878 = vperm.xlu1 %1211, %v860_v29   ;;  %v730_v7 = vld [vmem:[#allocation2 + $0x10] sm:$0xff] }
  0x5c   : > { %1122 = vmatprep.subr.msk.mxu0 %vm436_vm0, %v448_v9 }
  0x5d   : > { %1143 = vmatpush3.xpose.msk.msra.mxu1 %vm436_vm0, %v457_v8 }
  0x5e   : > { %1144 = vmatprep.subr.msk.mxu1 %vm436_vm0, %v456_v10 }
  0x5f   : > { %1123 = vmatpush3.xpose.msk.msra.mxu0 %vm436_vm0, %v448_v9 }
  0x60   : > { %1124 = vmatprep.subr.msk.mxu0 %vm436_vm0, %v447_v11 }
  0x61   : > { %1145 = vmatpush3.xpose.msk.msra.mxu1 %vm436_vm0, %v456_v10 }
  0x62   : > { %1146 = vmatprep.subr.msk.mxu1 %vm436_vm0, %v455_v12 }
  0x63   : > { %1125 = vmatpush3.xpose.msk.msra.mxu0 %vm436_vm0, %v447_v11 }
  0x64   : > { %1126 = vmatprep.subr.msk.mxu0 %vm436_vm0, %v446_v13 }
  0x65   : > { %1147 = vmatpush3.xpose.msk.msra.mxu1 %vm436_vm0, %v455_v12 }
  0x66   : > { %1148 = vmatprep.subr.msk.mxu1 %vm436_vm0, %v454_v14 }
  0x67   : > { %1127 = vmatpush3.xpose.msk.msra.mxu0 %vm436_vm0, %v446_v13 }
  0x68   : > { %1128 = vmatprep.subr.msk.mxu0 %vm436_vm0, %v445_v15 }
  0x69   : > { %1149 = vmatpush3.xpose.msk.msra.mxu1 %vm436_vm0, %v454_v14 }
  0x6a   : > { %1150 = vmatprep.subr.msk.mxu1 %vm436_vm0, %v453_v16 }
  0x6b   : > { %1129 = vmatpush3.xpose.msk.msra.mxu0 %vm436_vm0, %v445_v15 }
  0x6c   : > { %1158 = vmatprep.subr.msk.mxu0 %vm732_vm1, %v464_v20 }
  0x6d   : > { %1151 = vmatpush3.xpose.msk.msra.mxu1 %vm436_vm0, %v453_v16 }
  0x6e   : > { %1131 = vmatmul.mubr.msk.f32.vlgmr.msra.gmra.mxu0 %vm436_vm0, %v442_v17  ;;  %1172 = vmatprep.subr.msk.mxu1 %vm732_vm1, %v464_v20 }
  0x6f   : > { %1133 = vmatprep.mubr.msk.f32.mxu0 %vm436_vm0, %v443_v18  ;;  %1159 = vmatpush3.xpose.msk.msra.mxu0 %vm732_vm1, %v464_v20 }
  0x70   : > { %1153 = vmatmul.mubr.msk.f32.vlgmr.msra.gmra.mxu1 %vm436_vm0, %v442_v17  ;;  %1160 = vmatprep.subr.msk.mxu0 %vm732_vm1, %v463_v21 }
  0x71   : > { %1155 = vmatprep.mubr.msk.f32.mxu1 %vm436_vm0, %v443_v18  ;;  %1176 = vmatpush3.xpose.msk.msra.mxu1 %vm732_vm1, %v464_v20 }
  0x72   : > { %1134 = vmatmul.mubr.msk.f32.gmra.mxu0 %vm436_vm0, %v444_v19  ;;  %1173 = vmatprep.subr.msk.mxu1 %vm732_vm1, %v463_v21 }
  0x73   : > { %1161 = vmatpush3.xpose.msk.msra.mxu0 %vm732_vm1, %v463_v21 }
  0x74   : > { %1156 = vmatmul.mubr.msk.f32.gmra.mxu1 %vm436_vm0, %v444_v19  ;;  %1162 = vmatprep.subr.msk.mxu0 %vm732_vm1, %v462_v22 }
  0x75   : > { %1177 = vmatpush3.xpose.msk.msra.mxu1 %vm732_vm1, %v463_v21 }
  0x76   : > { %1174 = vmatprep.subr.msk.mxu1 %vm732_vm1, %v462_v22 }
  0x77   : > { %1163 = vmatpush3.xpose.msk.msra.mxu0 %vm732_vm1, %v462_v22 }
  0x78   : > { %1164 = vmatprep.subr.msk.mxu0 %vm732_vm1, %v461_v23 }
  0x79   : > { %1178 = vmatpush3.xpose.msk.msra.mxu1 %vm732_vm1, %v462_v22 }
  0x7a   : > { %1175 = vmatprep.subr.msk.mxu1 %vm732_vm1, %v461_v23 }
  0x7b   : > { %1165 = vmatpush3.xpose.msk.msra.mxu0 %vm732_vm1, %v461_v23 }
  0x7d   : > { %1179 = vmatpush3.xpose.msk.msra.mxu1 %vm732_vm1, %v461_v23 }
  0xd1   : > { %v864_v4 = vpop.permute.xlu0 %863 }
  0xd2   : > { %v874_v11 = vpop.permute.xlu1 %873 }
  0xd5   : > { %v869_v12 = vpop.permute.xlu0 %868 }
  0xd6   : > { %v879_v17 = vpop.permute.xlu1 %878 }
 0x12e   : > { %v1132_v30 = vpop.f32.mrf.mxu0 }
 0x12f   : > { %v1066_v31 = vmul.f32 -1.442695, %v1132_v30 }
 0x130   : > { %v568_v32 = vpop.f32.mrf.mxu0  ;;  %v1154_v46 = vpop.f32.mrf.mxu1 }
 0x131   : > { %1212 = vpow2.f32 %v1066_v31  ;;  %v1065_v33 = vmul.f32 -1.442695, %v568_v32 }
 0x132   : > { %v1135_v34 = vpop.f32.mrf.mxu0  ;;  %v677_v48 = vpop.f32.mrf.mxu1 }
 0x133   : > { %1214 = vpow2.f32 %v1065_v33  ;;  %v1068_v35 = vmul.f32 -1.442695, %v1135_v34 }
 0x134   : > { %v578_v36 = vpop.f32.mrf.mxu0  ;;  %v1157_v53 = vpop.f32.mrf.mxu1 }
 0x135   : > { %1216 = vpow2.f32 %v1068_v35  ;;  %v1067_v37 = vmul.f32 -1.442695, %v578_v36 }
 0x136   : > { %v687_v59 = vpop.f32.mrf.mxu1 }
 0x137   : > { %1218 = vpow2.f32 %v1067_v37 }
 0x13e   : > { %v1213_v38 = vpop.eup %1212 }
 0x13f   : > { %v709_v39 = vadd.f32 1.0, %v1213_v38 }
 0x140   : > { %v1215_v40 = vpop.eup %1214 }
 0x141   : > { %1220 = vrcp.f32 %v709_v39  ;;  %v708_v41 = vadd.f32 1.0, %v1215_v40 }
 0x142   : > { %v1217_v42 = vpop.eup %1216 }
 0x143   : > { %1222 = vrcp.f32 %v708_v41  ;;  %v711_v43 = vadd.f32 1.0, %v1217_v42 }
 0x144   : > { %v1219_v44 = vpop.eup %1218 }
 0x145   : > { %1224 = vrcp.f32 %v711_v43  ;;  %v710_v45 = vadd.f32 1.0, %v1219_v44 }
 0x147   : > { %1226 = vrcp.f32 %v710_v45 }
 0x14e   : > { %v1221_v47 = vpop.eup %1220 }
 0x14f   : > { %v721_v50 = vmul.f32 %v1221_v47, %v1132_v30 }
 0x150   : > { %v1223_v49 = vpop.eup %1222 }
 0x151   : > { %v720_v51 = vmul.f32 %v1223_v49, %v568_v32  ;;  %v725_v57 = vmul.f32 %v1154_v46, %v721_v50 }
 0x152   : > { %v1225_v52 = vpop.eup %1224 }
 0x153   : > { %v724_v54 = vmul.f32 %v720_v51, %v677_v48  ;;  %v723_v56 = vmul.f32 %v1225_v52, %v1135_v34 }
 0x154   : > { %v1227_v55 = vpop.eup %1226 }
 0x155   : > { %v722_v58 = vmul.f32 %v1227_v55, %v578_v36  ;;  %1166 = vmatprep.mubr.msk.f32.mxu0 %vm732_vm1, %v724_v54  ;;  %v727_v61 = vmul.f32 %v1157_v53, %v723_v56 }
 0x156   : > { %1167 = vmatmul.mubr.msk.f32.vlgmr.msra.gmra.mxu0 %vm732_vm1, %v725_v57 }
 0x157   : > { %v726_v60 = vmul.f32 %v722_v58, %v687_v59 }
 0x159   : > { %1169 = vmatprep.mubr.msk.f32.mxu1 %vm732_vm1, %v726_v60 }
 0x15a   : > { %1170 = vmatmul.mubr.msk.f32.vlgmr.msra.gmra.mxu1 %vm732_vm1, %v727_v61 }
 0x216   : > { %v1168_v63 = vpop.f32.mrf.mxu0 }
 0x217   : > { %v843_v1 = vadd.f32 %v1168_v63, %v729_v62 }
 0x218   : > { %v823_v2 = vpop.f32.mrf.mxu0 }
 0x219   : > { %847 = vst.msk [vmem:[#allocation2 + $0x8] sm:$0xff] %vm436_vm0, %v843_v1  ;;  %v842_v5 = vadd.f32 %v823_v2, %v728_v0 }
 0x21a   : > { %v1171_v6 = vpop.f32.mrf.mxu1 }
 0x21b   : > { %846 = vst.msk [vmem:[#allocation2] sm:$0xff] %vm436_vm0, %v842_v5  ;;  %v845_v8 = vadd.f32 %v1171_v6, %v731_v3 }
 0x21c   : > { %v833_v9 = vpop.f32.mrf.mxu1 }
 0x21d   : > { %849 = vst.msk [vmem:[#allocation2 + $0x18] sm:$0xff] %vm436_vm0, %v845_v8  ;;  %v844_v10 = vadd.f32 %v833_v9, %v730_v7 }
 0x21f   : > { %848 = vst.msk [vmem:[#allocation2 + $0x10] sm:$0xff] %vm436_vm0, %v844_v10 }
 0x220   : > { %v854_v13 = vld [vmem:[#allocation2 + $0x8] sm:$0xff] }
 0x221   : > { %v882_v14 = vmul.f32 %v869_v12, %v854_v13 }
 0x222   : > { %v853_v15 = vld [vmem:[#allocation2] sm:$0xff] }
 0x223   : > { %v881_v16 = vmul.f32 %v864_v4, %v853_v15  ;;  %886 = vst.msk [vmem:[%s1416_s21 + $0x8] sm:$0xff] %vm436_vm0, %v882_v14 }
 0x224   : > { %v856_v18 = vld [vmem:[#allocation2 + $0x18] sm:$0xff] }
 0x225   : > { %885 = vst.msk [vmem:[%s1416_s21] sm:$0xff] %vm436_vm0, %v881_v16  ;;  %v884_v19 = vmul.f32 %v879_v17, %v856_v18 }
 0x226   : > { %v855_v20 = vld [vmem:[#allocation2 + $0x10] sm:$0xff] }
 0x227   : > { %v883_v21 = vmul.f32 %v874_v11, %v855_v20  ;;  %888 = vst.msk [vmem:[%s1416_s21 + $0x18] sm:$0xff] %vm436_vm0, %v884_v19 }
 0x229   : > { %887 = vst.msk [vmem:[%s1416_s21 + $0x10] sm:$0xff] %vm436_vm0, %v883_v21 }
 0x22a PF: > { %s37_s27 = sadd.s32 1, %s1300_s27   ;;  %s1541_s3 = smov %s1296_s26 }
 0x22b   : > { %p34_p3 = scmp.ge.s32.totalorder %s37_s27, 7   ;;  %s1542_s26 = smov %s1544_s28 }
 0x22d   :  { %36 = sbr.rel (!%p34_p3) target bundleno = 48 (0x30), region = 94 }

</bundles_post_ra>
